<compile_context>
chip_gen: v5e
topology: v5e:2x2
jax: 0.10.0
libtpu: 0.0.40
codegen_flags: <defaults>
</compile_context>

<pallas_src>
import functools

import jax
import jax.numpy as jnp
from jax.experimental import pallas as pl
from jax.experimental.pallas import tpu as pltpu


# ---------------------------------------------------------------------------
# helpers
# ---------------------------------------------------------------------------
def _round_up(x, m):
    return ((x + m - 1) // m) * m


def _pad_last(a, target):
    pad = target - a.shape[-1]
    if pad == 0:
        return a
    return jnp.pad(a, [(0, 0)] * (a.ndim - 1) + [(0, pad)])


def _vmem_budget():
    """Generation-aware VMEM budget with ~12.5% (>=8 MiB) headroom."""
    cap = 64 << 20  # conservative default = v7x per-TC VMEM
    try:
        cap = int(getattr(pltpu.get_tpu_info(), "vmem_capacity_bytes", cap))
    except Exception:
        pass
    return max(32 << 20, cap - max(8 << 20, cap // 8))


def _choose_row_tile(n_rows, per_row_bytes, fixed_bytes, budget, max_tile=4096):
    avail = max(budget - fixed_bytes, 8 * per_row_bytes)
    tile = max(8, min(avail // per_row_bytes, max_tile))
    tile = (tile // 128) * 128 if tile >= 128 else _round_up(tile, 8)
    return int(min(tile, _round_up(n_rows, 8)))


# ---------------------------------------------------------------------------
# Kernel 1: column-wise unbiased variance (torch.var(x, dim=0)).
# Shifted one-pass sum / sum-of-squares (shift = first row). Accumulators are
# (8, col_tile) VMEM scratch (sublane-aligned whole-vreg adds per tile); the 8
# sublanes are collapsed once in the finalize step. Row-validity masking only
# happens on the last (partial) row tile, decided statically.
# ---------------------------------------------------------------------------
def _variance_kernel(x_ref, var_ref, shift_ref, s1_ref, s2_ref, *,
                     n_rows, row_tile):
    i = pl.program_id(1)                 # row (reduction) axis, innermost
    n_row_tiles = pl.num_programs(1)

    @pl.when(i == 0)
    def _init():
        shift_ref[...] = x_ref[0:1, :].astype(jnp.float32)
        s1_ref[...] = jnp.zeros_like(s1_ref)
        s2_ref[...] = jnp.zeros_like(s2_ref)

    x = x_ref[...].astype(jnp.float32)
    ct = x.shape[1]

    def _accum(xc):
        # (row_tile, ct) -> (row_tile//8, 8, ct): summing the leading axis is
        # pure whole-vreg VPU adds into the (8, ct) accumulators (no per-step
        # cross-sublane XLU reduce).
        s1_ref[...] += jnp.sum(xc.reshape(-1, 8, ct), axis=0)
        s2_ref[...] += jnp.sum((xc * xc).reshape(-1, 8, ct), axis=0)

    if n_rows % row_tile == 0:           # static: no padded rows ever -> no mask
        _accum(x - shift_ref[...])
    else:
        @pl.when(i < n_row_tiles - 1)
        def _full_tile():
            _accum(x - shift_ref[...])

        @pl.when(i == n_row_tiles - 1)
        def _partial_tile():
            row_ids = (i * row_tile
                       + jax.lax.broadcasted_iota(jnp.int32, x.shape, 0))
            _accum(jnp.where(row_ids < n_rows, x - shift_ref[...], 0.0))

    @pl.when(i == n_row_tiles - 1)
    def _finalize():
        n = jnp.float32(n_rows)
        s1 = jnp.sum(s1_ref[...], axis=0, keepdims=True)   # collapse 8 sublanes once
        s2 = jnp.sum(s2_ref[...], axis=0, keepdims=True)
        var_ref[...] = (s2 - s1 * s1 / n) / (n - 1.0)


def column_variance(x, *, row_tile=None):
    n, d = x.shape
    budget = _vmem_budget()
    # Column tiling: two "parallel" column tiles when lane-aligned (both v7x
    # TensorCores get work); otherwise a single full-width tile.
    col_tile = d // 2 if (d % 256 == 0) else d
    n_col_tiles = d // col_tile

    scratch_bytes = (1 + 8 + 8) * col_tile * 4
    per_row = 2 * col_tile * x.dtype.itemsize            # double-buffered x block
    if row_tile is None:
        row_tile = _choose_row_tile(n, per_row, scratch_bytes + (4 << 20), budget)
    row_tile = int(min(_round_up(row_tile, 8), _round_up(n, 8)))
    n_row_tiles = pl.cdiv(n, row_tile)

    needed = scratch_bytes + per_row * row_tile + 2 * col_tile * 4 + (4 << 20)
    vmem_limit = int(min(budget, max(needed, 32 << 20)))
    cost = pl.CostEstimate(
        flops=int(4 * n * d),
        transcendentals=0,
        bytes_accessed=int(n * d * x.dtype.itemsize + d * 4))

    out = pl.pallas_call(
        functools.partial(_variance_kernel, n_rows=n, row_tile=row_tile),
        out_shape=jax.ShapeDtypeStruct((1, d), jnp.float32),
        grid=(n_col_tiles, n_row_tiles),
        in_specs=[pl.BlockSpec((row_tile, col_tile), lambda j, i: (i, j))],
        out_specs=pl.BlockSpec((1, col_tile), lambda j, i: (0, j)),
        scratch_shapes=[pltpu.VMEM((1, col_tile), jnp.float32),   # shift row
                        pltpu.VMEM((8, col_tile), jnp.float32),   # partial sums
                        pltpu.VMEM((8, col_tile), jnp.float32)],  # partial sumsq
        compiler_params=pltpu.CompilerParams(
            dimension_semantics=("parallel", "arbitrary"),
            vmem_limit_bytes=vmem_limit),
        cost_estimate=cost,
    )(x)
    return out[0]


# ---------------------------------------------------------------------------
# Kernel 2: hot path. X row tile -> bf16 -> ONE fused MXU matmul against the
# resident concatenated [W_info_full | W_red_full] matrix, f32 bias/ELU/product,
# direct (row_tile, d_out) store (no padded output pass).
# ---------------------------------------------------------------------------
def _separate_mapping_kernel(x_ref, w_ref, b_ref, o_ref, *, d_half, d_out,
                             matmul_dtype):
    x = x_ref[...].astype(matmul_dtype)
    y = jnp.dot(x, w_ref[...], preferred_element_type=jnp.float32) + b_ref[...]
    info = y[:, :d_half]
    red = y[:, d_half:]
    red = jnp.where(red > 0, red, jnp.expm1(red))        # ELU(alpha=1), f32
    o_ref[...] = (info * red)[:, :d_out].astype(o_ref.dtype)


def separate_mapping_core(x, w_cat, b_cat, d_out, *, row_tile=None,
                          matmul_dtype=jnp.bfloat16):
    n, d_in = x.shape
    two_d_half = w_cat.shape[1]
    d_half = two_d_half // 2
    budget = _vmem_budget()
    w_itemsize = jnp.dtype(matmul_dtype).itemsize

    # Resident operands: the pipeline still allocates 2 buffers for them even
    # though the index_map is constant (fetch happens only once).
    # TODO(synk): single-buffer them (pl.Buffered(1)) once resident blocks are
    # reliably supported on the main pallas_call pipeline.
    fixed = (2 * d_in * two_d_half * w_itemsize      # W_cat, double-buffered
             + 2 * two_d_half * 4                    # b_cat, double-buffered
             + (4 << 20))                            # slack for Mosaic scratch
    per_row = 2 * (d_in * x.dtype.itemsize + d_out * 4)  # double-buffered x/out
    if row_tile is None:
        row_tile = _choose_row_tile(n, per_row, fixed, budget)
    row_tile = int(min(_round_up(row_tile, 8), _round_up(n, 8)))
    grid = (pl.cdiv(n, row_tile),)

    vmem_limit = int(min(budget, max(fixed + per_row * row_tile, 32 << 20)))
    cost = pl.CostEstimate(
        flops=int(2 * n * d_in * two_d_half + 4 * n * d_half),
        transcendentals=int(n * d_half),
        bytes_accessed=int(n * d_in * x.dtype.itemsize
                           + d_in * two_d_half * w_itemsize
                           + two_d_half * 4
                           + n * d_out * 4))

    return pl.pallas_call(
        functools.partial(_separate_mapping_kernel, d_half=d_half, d_out=d_out,
                          matmul_dtype=matmul_dtype),
        out_shape=jax.ShapeDtypeStruct((n, d_out), jnp.float32),
        grid=grid,
        in_specs=[
            pl.BlockSpec((row_tile, d_in), lambda i: (i, 0)),      # X row tile
            pl.BlockSpec((d_in, two_d_half), lambda i: (0, 0)),    # W_cat (resident)
            pl.BlockSpec((1, two_d_half), lambda i: (0, 0)),       # b_cat (resident)
        ],
        out_specs=pl.BlockSpec((row_tile, d_out), lambda i: (i, 0)),
        compiler_params=pltpu.CompilerParams(
            dimension_semantics=("parallel",),
            vmem_limit_bytes=vmem_limit),
        cost_estimate=cost,
    )(x, w_cat, b_cat)


# ---------------------------------------------------------------------------
# Full forward: variance -> descending sort -> weight-row scatter + concat ->
# fused mapping kernel.
# ---------------------------------------------------------------------------
def separate_mapping_forward(input_features, params, output_dim, *,
                             row_tile=None, matmul_dtype=jnp.bfloat16):
    n, d_in = input_features.shape
    d_out = output_dim
    if not (0 < d_out < d_in):
        raise ValueError("requires 0 < output_dim < input_dim (non-empty redundant split)")
    if n < 2:
        raise ValueError("unbiased variance needs at least 2 rows")

    var = column_variance(input_features, row_tile=row_tile)
    # TODO(synk): argsort(-var) tie-breaking may differ from torch.sort(descending=True)
    # for exactly-equal variances (only changes which side of the split a tied column
    # lands on, not the math of either branch).
    sorted_indices = jnp.argsort(-var)
    info_idx = sorted_indices[:d_out]
    red_idx = sorted_indices[d_out:]

    # Scatter weight rows into full [d_in, d_half] matrices (X @ W_full ==
    # X[:, idx] @ W exactly; pruned rows are zeros) and concatenate both branches
    # along the output axis so the kernel runs ONE 2*d_half-wide MXU matmul.
    d_half = _round_up(d_out, 128)      # lane-aligned split point between branches
    wi = jnp.zeros((d_in, d_half), matmul_dtype).at[info_idx].set(
        _pad_last(params["w_info_t"], d_half).astype(matmul_dtype))
    wr = jnp.zeros((d_in, d_half), matmul_dtype).at[red_idx].set(
        _pad_last(params["w_red_t"], d_half).astype(matmul_dtype))
    w_cat = jnp.concatenate([wi, wr], axis=1)                       # (d_in, 2*d_half)
    b_cat = jnp.concatenate([_pad_last(params["b_info"], d_half),
                             _pad_last(params["b_red"], d_half)],
                            axis=1).astype(jnp.float32)             # (1, 2*d_half)

    return separate_mapping_core(input_features, w_cat, b_cat, d_out,
                                 row_tile=row_tile, matmul_dtype=matmul_dtype)


def init_params(key, input_dim, output_dim):
    d_red = input_dim - output_dim
    k1, k2, k3, k4 = jax.random.split(key, 4)
    # nn.Linear-style init: U(-1/sqrt(fan_in), 1/sqrt(fan_in)).
    bound_i = 1.0 / jnp.sqrt(output_dim)
    bound_r = 1.0 / jnp.sqrt(d_red)
    w_info = jax.random.uniform(k1, (output_dim, output_dim), jnp.float32,
                                -bound_i, bound_i)           # torch layout [out, in]
    b_info = jax.random.uniform(k2, (output_dim,), jnp.float32, -bound_i, bound_i)
    w_red = jax.random.uniform(k3, (output_dim, d_red), jnp.float32,
                               -bound_r, bound_r)            # torch layout [out, in]
    b_red = jax.random.uniform(k4, (output_dim,), jnp.float32, -bound_r, bound_r)
    return {
        "w_info_t": w_info.T,                  # [in, out] for x @ W_t
        "b_info": b_info.reshape(1, output_dim),
        "w_red_t": w_red.T,                    # [in, out]
        "b_red": b_red.reshape(1, output_dim),
    }


if __name__ == "__main__":
    N = 250                 # not a multiple of the row tile -> exercises the masked
    INPUT_DIM = 80          # last-tile path and partial output-block writeback
    OUTPUT_DIM = 32
    ROW_TILE = 128          # -> 2 row tiles for both kernels

    key = jax.random.PRNGKey(0)
    kx, kp = jax.random.split(key)
    x = jax.random.normal(kx, (N, INPUT_DIM), dtype=jnp.float32)
    params = init_params(kp, INPUT_DIM, OUTPUT_DIM)

    out = separate_mapping_forward(x, params, OUTPUT_DIM, row_tile=ROW_TILE)
    out = jax.block_until_ready(out)
    assert out.shape == (N, OUTPUT_DIM)

    # --- checks ------------------------------------------------------------
    # 1) variance kernel vs jnp.var (unbiased)
    var_k = jax.block_until_ready(column_variance(x, row_tile=ROW_TILE))
    var_ref = jnp.var(x, axis=0, ddof=1)
    assert jnp.allclose(var_k, var_ref, atol=1e-4, rtol=1e-4)

    # 2) exact-mirror reference of the fused mapping kernel (same bf16 concat math,
    #    same kernel-produced variance ordering)
    idx_k = jnp.argsort(-var_k)
    d_half = _round_up(OUTPUT_DIM, 128)
    wi = jnp.zeros((INPUT_DIM, d_half), jnp.bfloat16).at[idx_k[:OUTPUT_DIM]].set(
        _pad_last(params["w_info_t"], d_half).astype(jnp.bfloat16))
    wr = jnp.zeros((INPUT_DIM, d_half), jnp.bfloat16).at[idx_k[OUTPUT_DIM:]].set(
        _pad_last(params["w_red_t"], d_half).astype(jnp.bfloat16))
    w_cat = jnp.concatenate([wi, wr], axis=1)
    b_cat = jnp.concatenate([_pad_last(params["b_info"], d_half),
                             _pad_last(params["b_red"], d_half)], axis=1)
    y = jnp.dot(x.astype(jnp.bfloat16), w_cat,
                preferred_element_type=jnp.float32) + b_cat
    info_m = y[:, :d_half]
    red_m = y[:, d_half:]
    red_m = jnp.where(red_m > 0, red_m, jnp.expm1(red_m))
    ref_mirror = (info_m * red_m)[:, :OUTPUT_DIM]
    assert jnp.allclose(out, ref_mirror, atol=2e-3, rtol=2e-3)

    # 3) torch-semantics f32 reference (column gather + f32 matmuls); loose tolerance
    #    covers the bf16 matmul inputs in the kernel.
    idx = jnp.argsort(-var_ref)
    info = x[:, idx[:OUTPUT_DIM]]
    red = x[:, idx[OUTPUT_DIM:]]
    info_f = info @ params["w_info_t"] + params["b_info"]
    red_f = red @ params["w_red_t"] + params["b_red"]
    ref_f32 = info_f * jnp.where(red_f > 0, red_f, jnp.expm1(red_f))
    assert jnp.allclose(out, ref_f32, atol=5e-2, rtol=5e-2)

    print("KERNEL_OK")
</pallas_src>

<mosaic_0001>
module attributes {stable_mosaic.version = 11 : i64} {
  func.func @_variance_kernel(%arg0: i32, %arg1: i32, %arg2: memref<128x80xf32, #tpu.memory_space<vmem>>, %arg3: memref<1x80xf32, #tpu.memory_space<vmem>>, %arg4: memref<1x80xf32, #tpu.memory_space<vmem>>, %arg5: memref<8x80xf32, #tpu.memory_space<vmem>>, %arg6: memref<8x80xf32, #tpu.memory_space<vmem>>) attributes {dimension_semantics = [#tpu.dimension_semantics<parallel>, #tpu.dimension_semantics<arbitrary>], iteration_bounds = array<i64: 1, 2>, scalar_prefetch = 0 : i64, scratch_operands = 3 : i64, tpu.core_type = #tpu.core_type<tc>, window_params = [{transform_indices = @transform_0, window_bounds = array<i64: 128, 80>}, {transform_indices = @transform_1, window_bounds = array<i64: 1, 80>}]} {
    %c0_i32 = arith.constant 0 : i32
    %0 = arith.cmpi eq, %arg1, %c0_i32 : i32
    %1 = arith.extui %0 : i1 to i32
    %c0_i32_0 = arith.constant 0 : i32
    %2 = arith.cmpi ne, %1, %c0_i32_0 : i32
    scf.if %2 {
      %c0_7 = arith.constant 0 : index
      %c0_8 = arith.constant 0 : index
      %13 = vector.load %arg2[%c0_7, %c0_8] : memref<128x80xf32, #tpu.memory_space<vmem>>, vector<1x80xf32>
      %c0_9 = arith.constant 0 : index
      %c0_10 = arith.constant 0 : index
      %14 = vector.load %arg4[%c0_9, %c0_10] : memref<1x80xf32, #tpu.memory_space<vmem>>, vector<1x80xf32>
      tpu.vector_store %arg4[%c0_9, %c0_10], %13 {strides = array<i32>} : memref<1x80xf32, #tpu.memory_space<vmem>>, vector<1x80xf32>,
      %cst = arith.constant 0.000000e+00 : f32
      %15 = vector.broadcast %cst : f32 to vector<8x80xf32>
      %c0_11 = arith.constant 0 : index
      %c0_12 = arith.constant 0 : index
      %16 = vector.load %arg5[%c0_11, %c0_12] : memref<8x80xf32, #tpu.memory_space<vmem>>, vector<8x80xf32>
      tpu.vector_store %arg5[%c0_11, %c0_12], %15 {strides = array<i32>} : memref<8x80xf32, #tpu.memory_space<vmem>>, vector<8x80xf32>,
      %cst_13 = arith.constant 0.000000e+00 : f32
      %17 = vector.broadcast %cst_13 : f32 to vector<8x80xf32>
      %c0_14 = arith.constant 0 : index
      %c0_15 = arith.constant 0 : index
      %18 = vector.load %arg6[%c0_14, %c0_15] : memref<8x80xf32, #tpu.memory_space<vmem>>, vector<8x80xf32>
      tpu.vector_store %arg6[%c0_14, %c0_15], %17 {strides = array<i32>} : memref<8x80xf32, #tpu.memory_space<vmem>>, vector<8x80xf32>,
    } else {
    }
    %c0 = arith.constant 0 : index
    %c0_1 = arith.constant 0 : index
    %3 = vector.load %arg2[%c0, %c0_1] : memref<128x80xf32, #tpu.memory_space<vmem>>, vector<128x80xf32>
    %c1_i32 = arith.constant 1 : i32
    %4 = arith.cmpi slt, %arg1, %c1_i32 : i32
    %5 = arith.extui %4 : i1 to i32
    %c0_i32_2 = arith.constant 0 : i32
    %6 = arith.cmpi ne, %5, %c0_i32_2 : i32
    scf.if %6 {
      %c0_7 = arith.constant 0 : index
      %c0_8 = arith.constant 0 : index
      %13 = vector.load %arg4[%c0_7, %c0_8] : memref<1x80xf32, #tpu.memory_space<vmem>>, vector<1x80xf32>
      %14 = vector.broadcast %13 : vector<1x80xf32> to vector<128x80xf32>
      %15 = arith.subf %3, %14 : vector<128x80xf32>
      %c0_9 = arith.constant 0 : index
      %c0_10 = arith.constant 0 : index
      %16 = vector.load %arg5[%c0_9, %c0_10] : memref<8x80xf32, #tpu.memory_space<vmem>>, vector<8x80xf32>
      %17 = vector.shape_cast %15 : vector<128x80xf32> to vector<16x8x80xf32>
      %cst = arith.constant dense<0.000000e+00> : vector<8x80xf32>
      %18 = vector.multi_reduction <add>, %17, %cst [0] : vector<16x8x80xf32> to vector<8x80xf32>
      %19 = arith.addf %16, %18 : vector<8x80xf32>
      %c0_11 = arith.constant 0 : index
      %c0_12 = arith.constant 0 : index
      %20 = vector.load %arg5[%c0_11, %c0_12] : memref<8x80xf32, #tpu.memory_space<vmem>>, vector<8x80xf32>
      tpu.vector_store %arg5[%c0_11, %c0_12], %19 {strides = array<i32>} : memref<8x80xf32, #tpu.memory_space<vmem>>, vector<8x80xf32>,
      %c0_13 = arith.constant 0 : index
      %c0_14 = arith.constant 0 : index
      %21 = vector.load %arg6[%c0_13, %c0_14] : memref<8x80xf32, #tpu.memory_space<vmem>>, vector<8x80xf32>
      %22 = arith.mulf %15, %15 : vector<128x80xf32>
      %23 = vector.shape_cast %22 : vector<128x80xf32> to vector<16x8x80xf32>
      %cst_15 = arith.constant dense<0.000000e+00> : vector<8x80xf32>
      %24 = vector.multi_reduction <add>, %23, %cst_15 [0] : vector<16x8x80xf32> to vector<8x80xf32>
      %25 = arith.addf %21, %24 : vector<8x80xf32>
      %c0_16 = arith.constant 0 : index
      %c0_17 = arith.constant 0 : index
      %26 = vector.load %arg6[%c0_16, %c0_17] : memref<8x80xf32, #tpu.memory_space<vmem>>, vector<8x80xf32>
      tpu.vector_store %arg6[%c0_16, %c0_17], %25 {strides = array<i32>} : memref<8x80xf32, #tpu.memory_space<vmem>>, vector<8x80xf32>,
    } else {
    }
    %c1_i32_3 = arith.constant 1 : i32
    %7 = arith.cmpi eq, %arg1, %c1_i32_3 : i32
    %8 = arith.extui %7 : i1 to i32
    %c0_i32_4 = arith.constant 0 : i32
    %9 = arith.cmpi ne, %8, %c0_i32_4 : i32
    scf.if %9 {
      %c128_i32 = arith.constant 128 : i32
      %13 = arith.muli %arg1, %c128_i32 : i32
      %14 = tpu.iota {dimensions = array<i32: 0>} : vector<128x80xi32>
      %15 = vector.broadcast %13 : i32 to vector<128x80xi32>
      %16 = arith.addi %15, %14 : vector<128x80xi32>
      %c250_i32 = arith.constant 250 : i32
      %17 = vector.broadcast %c250_i32 : i32 to vector<128x80xi32>
      %18 = arith.cmpi slt, %16, %17 : vector<128x80xi32>
      %c0_7 = arith.constant 0 : index
      %c0_8 = arith.constant 0 : index
      %19 = vector.load %arg4[%c0_7, %c0_8] : memref<1x80xf32, #tpu.memory_space<vmem>>, vector<1x80xf32>
      %20 = vector.broadcast %19 : vector<1x80xf32> to vector<128x80xf32>
      %21 = arith.subf %3, %20 : vector<128x80xf32>
      %cst = arith.constant 0.000000e+00 : f32
      %22 = vector.broadcast %cst : f32 to vector<128x80xf32>
      %23 = arith.select %18, %21, %22 : vector<128x80xi1>, vector<128x80xf32>
      %c0_9 = arith.constant 0 : index
      %c0_10 = arith.constant 0 : index
      %24 = vector.load %arg5[%c0_9, %c0_10] : memref<8x80xf32, #tpu.memory_space<vmem>>, vector<8x80xf32>
      %25 = vector.shape_cast %23 : vector<128x80xf32> to vector<16x8x80xf32>
      %cst_11 = arith.constant dense<0.000000e+00> : vector<8x80xf32>
      %26 = vector.multi_reduction <add>, %25, %cst_11 [0] : vector<16x8x80xf32> to vector<8x80xf32>
      %27 = arith.addf %24, %26 : vector<8x80xf32>
      %c0_12 = arith.constant 0 : index
      %c0_13 = arith.constant 0 : index
      %28 = vector.load %arg5[%c0_12, %c0_13] : memref<8x80xf32, #tpu.memory_space<vmem>>, vector<8x80xf32>
      tpu.vector_store %arg5[%c0_12, %c0_13], %27 {strides = array<i32>} : memref<8x80xf32, #tpu.memory_space<vmem>>, vector<8x80xf32>,
      %c0_14 = arith.constant 0 : index
      %c0_15 = arith.constant 0 : index
      %29 = vector.load %arg6[%c0_14, %c0_15] : memref<8x80xf32, #tpu.memory_space<vmem>>, vector<8x80xf32>
      %30 = arith.mulf %23, %23 : vector<128x80xf32>
      %31 = vector.shape_cast %30 : vector<128x80xf32> to vector<16x8x80xf32>
      %cst_16 = arith.constant dense<0.000000e+00> : vector<8x80xf32>
      %32 = vector.multi_reduction <add>, %31, %cst_16 [0] : vector<16x8x80xf32> to vector<8x80xf32>
      %33 = arith.addf %29, %32 : vector<8x80xf32>
      %c0_17 = arith.constant 0 : index
      %c0_18 = arith.constant 0 : index
      %34 = vector.load %arg6[%c0_17, %c0_18] : memref<8x80xf32, #tpu.memory_space<vmem>>, vector<8x80xf32>
      tpu.vector_store %arg6[%c0_17, %c0_18], %33 {strides = array<i32>} : memref<8x80xf32, #tpu.memory_space<vmem>>, vector<8x80xf32>,
    } else {
    }
    %c1_i32_5 = arith.constant 1 : i32
    %10 = arith.cmpi eq, %arg1, %c1_i32_5 : i32
    %11 = arith.extui %10 : i1 to i32
    %c0_i32_6 = arith.constant 0 : i32
    %12 = arith.cmpi ne, %11, %c0_i32_6 : i32
    scf.if %12 {
      %c0_7 = arith.constant 0 : index
      %c0_8 = arith.constant 0 : index
      %13 = vector.load %arg5[%c0_7, %c0_8] : memref<8x80xf32, #tpu.memory_space<vmem>>, vector<8x80xf32>
      %cst = arith.constant dense<0.000000e+00> : vector<80xf32>
      %14 = vector.multi_reduction <add>, %13, %cst [0] : vector<8x80xf32> to vector<80xf32>
      %15 = vector.shape_cast %14 : vector<80xf32> to vector<1x80xf32>
      %c0_9 = arith.constant 0 : index
      %c0_10 = arith.constant 0 : index
      %16 = vector.load %arg6[%c0_9, %c0_10] : memref<8x80xf32, #tpu.memory_space<vmem>>, vector<8x80xf32>
      %cst_11 = arith.constant dense<0.000000e+00> : vector<80xf32>
      %17 = vector.multi_reduction <add>, %16, %cst_11 [0] : vector<8x80xf32> to vector<80xf32>
      %18 = vector.shape_cast %17 : vector<80xf32> to vector<1x80xf32>
      %19 = arith.mulf %15, %15 : vector<1x80xf32>
      %cst_12 = arith.constant 2.500000e+02 : f32
      %20 = vector.broadcast %cst_12 : f32 to vector<1x80xf32>
      %21 = arith.divf %19, %20 : vector<1x80xf32>
      %22 = arith.subf %18, %21 : vector<1x80xf32>
      %cst_13 = arith.constant 2.500000e+02 : f32
      %cst_14 = arith.constant 1.000000e+00 : f32
      %23 = arith.subf %cst_13, %cst_14 : f32
      %24 = vector.broadcast %23 : f32 to vector<1x80xf32>
      %25 = arith.divf %22, %24 : vector<1x80xf32>
      %c0_15 = arith.constant 0 : index
      %c0_16 = arith.constant 0 : index
      %26 = vector.load %arg3[%c0_15, %c0_16] : memref<1x80xf32, #tpu.memory_space<vmem>>, vector<1x80xf32>
      tpu.vector_store %arg3[%c0_15, %c0_16], %25 {strides = array<i32>} : memref<1x80xf32, #tpu.memory_space<vmem>>, vector<1x80xf32>,
    } else {
    }
    return
  }
  func.func @transform_0(%arg0: i32, %arg1: i32) -> (i32, i32) {
    %c0_i32 = arith.constant 0 : i32
    return %arg1, %arg0 : i32, i32
  }
  func.func @transform_1(%arg0: i32, %arg1: i32) -> (i32, i32) {
    %c0_i32 = arith.constant 0 : i32
    %c0_i32_0 = arith.constant 0 : i32
    return %c0_i32, %arg0 : i32, i32
  }
}

</mosaic_0001>

<bundles_post_ra>
// kernel: tpu_custom_call.1
= control target key start
LH: loop header
LB: loop body
LE: loop exit
PB: predicated region body
PF: predicated region fallthrough
CT: control target
= control target key end

     0   :  { %6 = vsyncpa [#allocation6], 0  ;;  %s666_s6 = smov 0   ;;  %s668_s7 = smov 0   ;;  %s906_s0 = inlined_call_operand.vmem [shape: f32[250,80], index: 0, kind: input, shape index: {}]   ;;  %s907_s1 = inlined_call_operand.hbm [shape: f32[1,80], index: 1, kind: output, shape index: {}]  }
   0x1   :  { %s670_s8 = smov 0  }
   0x2 LB: > { %s542_s9 = sadd.s32 4294967295, %s650_s8   ;;  %s21_s10 = sadd.s32 1, %s646_s7  ;;  %s650_s8 = sphi %s670_s8, %s12_s8   ;;  %s646_s7 = sphi %s668_s7, %s909_s7   ;;  %s642_s6 = sphi %s666_s6, %s908_s6  }
   0x3   : > { %p22_p0 = scmp.ge.s32.totalorder %s21_s10, 2  ;;  %p545_p1 = scmp.ge.s32.totalorder %s650_s8, 1 }
   0x4   : > { %p106_p2 = scmp.lt.s32.totalorder %s650_s8, 3 }
   0x5   : > { %s911_s10 = smov (%p22_p0, %s21_s10), 0 }
   0x6   : > { %p107_p3 = pnand %p545_p1, %p106_p2 }
   0x7   : > { %s546_s11 = sshll.u32 (!%p107_p3), %s642_s6, 4  ;;  %p548_p5 = scmp.ne.s32.totalorder (!%p107_p3), %s642_s6, 0 }
   0x8   : > { %110 = sbr.rel (%p107_p3) target bundleno = 162 (0xa2), region = 24  ;;  %p125_p4 = scmp.lt.s32.totalorder (!%p107_p3), %s546_s11, 31 }
   0xd   : > { %s913_s11 = smov (!%p125_p4, %s546_s11), 31  ;;  %136 = sbr.rel (%p548_p5) target bundleno = 22 (0x16), region = 28 }
   0xe   : > { %s547_s12 = sshll.u32 %s913_s11, 3 }
   0xf   : > { %s131_s15 = scalar_lea.vmem %s906_s0, %s547_s12 }
  0x12   : > { %v137_v0 = vld [vmem:[%s131_s15] sm:$0x1]  ;;  %vm138_vm0 = vcmask 647168   ;;  %vm140_vm1 = vcmask 654336   ;;  %v652_v1 = vmov 0.0  }
  0x13   : > { %139 = vst.msk [vmem:[#allocation2] sm:$0x1] %vm138_vm0, %v137_v0 }
  0x14   : > { %141 = vst.msk [vmem:[#allocation3] sm:$0xff] %vm140_vm1, %v652_v1 }
  0x15   : > { %142 = vst.msk [vmem:[#allocation4] sm:$0xff] %vm140_vm1, %v652_v1 }
  0x16 PF: > { %v692_v2 = vld [vmem:[%s131_s15] sm:$0xff]  ;;  %v694_v3 = vld [vmem:[%s131_s15 + $0x8] sm:$0xff]  ;;  %v696_v4 = vld [vmem:[%s131_s15 + $0x10] sm:$0xff]  ;;  %p549_p6 = scmp.ge.s32.totalorder %s642_s6, 1 }
  0x17   : > { %v698_v5 = vld [vmem:[%s131_s15 + $0x18] sm:$0xff]  ;;  %v700_v6 = vld [vmem:[%s131_s15 + $0x20] sm:$0xff]  ;;  %v702_v7 = vld [vmem:[%s131_s15 + $0x28] sm:$0xff] }
  0x18   : > { %v704_v8 = vld [vmem:[%s131_s15 + $0x30] sm:$0xff]  ;;  %v706_v9 = vld [vmem:[%s131_s15 + $0x38] sm:$0xff]  ;;  %v708_v10 = vld [vmem:[%s131_s15 + $0x40] sm:$0xff]  ;;  %162 = sbr.rel (%p549_p6) target bundleno = 69 (0x45), region = 32 }
  0x19   : > { %v710_v11 = vld [vmem:[%s131_s15 + $0x48] sm:$0xff]  ;;  %v712_v12 = vld [vmem:[%s131_s15 + $0x50] sm:$0xff]  ;;  %v714_v13 = vld [vmem:[%s131_s15 + $0x58] sm:$0xff] }
  0x1a   : > { %v716_v14 = vld [vmem:[%s131_s15 + $0x60] sm:$0xff]  ;;  %v718_v15 = vld [vmem:[%s131_s15 + $0x68] sm:$0xff]  ;;  %v720_v16 = vld [vmem:[%s131_s15 + $0x70] sm:$0xff] }
  0x1b   : > { %v722_v17 = vld [vmem:[%s131_s15 + $0x78] sm:$0xff] }
  0x1d   : > { %v725_v18 = vld [vmem:[#allocation2] ss:$0 sm:$0xff]  ;;  %vm184_vm2 = vcmask 654336  }
  0x1e   : > { %v167_v19 = vsub.f32 %v692_v2, %v725_v18  ;;  %v168_v20 = vsub.f32 %v694_v3, %v725_v18  ;;  %v169_v21 = vsub.f32 %v696_v4, %v725_v18  ;;  %v170_v22 = vsub.f32 %v698_v5, %v725_v18 }
  0x1f   : > { %v171_v27 = vsub.f32 %v700_v6, %v725_v18  ;;  %v172_v30 = vsub.f32 %v702_v7, %v725_v18  ;;  %v173_v36 = vsub.f32 %v704_v8, %v725_v18  ;;  %v174_v40 = vsub.f32 %v706_v9, %v725_v18 }
  0x20   : > { %v185_v23 = vsel %vm184_vm2, %v167_v19, 0.0  ;;  %v186_v24 = vsel %vm184_vm2, %v168_v20, 0.0  ;;  %v188_v25 = vsel %vm184_vm2, %v169_v21, 0.0  ;;  %v190_v28 = vsel %vm184_vm2, %v170_v22, 0.0 }
  0x21   : > { %v187_v26 = vadd.f32 %v186_v24, %v185_v23  ;;  %v192_v31 = vsel %vm184_vm2, %v171_v27, 0.0  ;;  %v219_v33 = vmul.f32 %v167_v19, %v167_v19  ;;  %v220_v34 = vmul.f32 %v168_v20, %v168_v20 }
  0x22   : > { %v221_v35 = vmul.f32 %v169_v21, %v169_v21  ;;  %v194_v37 = vsel %vm184_vm2, %v172_v30, 0.0  ;;  %v222_v39 = vmul.f32 %v170_v22, %v170_v22  ;;  %v196_v41 = vsel %vm184_vm2, %v173_v36, 0.0 }
  0x23   : > { %v189_v29 = vadd.f32 %v188_v25, %v187_v26  ;;  %v223_v42 = vmul.f32 %v171_v27, %v171_v27  ;;  %v235_v44 = vsel %vm184_vm2, %v219_v33, 0.0  ;;  %v236_v45 = vsel %vm184_vm2, %v220_v34, 0.0 }
  0x24   : > { %v238_v46 = vsel %vm184_vm2, %v221_v35, 0.0  ;;  %v175_v47 = vsub.f32 %v708_v10, %v725_v18  ;;  %v198_v48 = vsel %vm184_vm2, %v174_v40, 0.0  ;;  %v237_v49 = vadd.f32 %v236_v45, %v235_v44 }
  0x25   : > { %v191_v32 = vadd.f32 %v190_v28, %v189_v29  ;;  %v224_v51 = vmul.f32 %v172_v30, %v172_v30  ;;  %v240_v52 = vsel %vm184_vm2, %v222_v39, 0.0  ;;  %v176_v53 = vsub.f32 %v710_v11, %v725_v18 }
  0x26   : > { %v200_v54 = vsel %vm184_vm2, %v175_v47, 0.0  ;;  %v239_v55 = vadd.f32 %v238_v46, %v237_v49  ;;  %v225_v57 = vmul.f32 %v173_v36, %v173_v36  ;;  %v242_v58 = vsel %vm184_vm2, %v223_v42, 0.0 }
  0x27   : > { %v193_v38 = vadd.f32 %v192_v31, %v191_v32  ;;  %v177_v59 = vsub.f32 %v712_v12, %v725_v18  ;;  %v202_v60 = vsel %vm184_vm2, %v176_v53, 0.0  ;;  %v226_v63 = vmul.f32 %v174_v40, %v174_v40 }
  0x28   : > { %v241_v61 = vadd.f32 %v240_v52, %v239_v55  ;;  %v244_v0 = vsel %vm184_vm2, %v224_v51, 0.0  ;;  %v178_v1 = vsub.f32 %v714_v13, %v725_v18  ;;  %v227_v22 = vmul.f32 %v175_v47, %v175_v47 }
  0x29   : > { %v195_v43 = vadd.f32 %v194_v37, %v193_v38  ;;  %v204_v19 = vsel %vm184_vm2, %v177_v59, 0.0  ;;  %v246_v23 = vsel %vm184_vm2, %v225_v57, 0.0  ;;  %v179_v24 = vsub.f32 %v716_v14, %v725_v18 }
  0x2a   : > { %v243_v20 = vadd.f32 %v242_v58, %v241_v61  ;;  %v206_v25 = vsel %vm184_vm2, %v178_v1, 0.0  ;;  %v228_v28 = vmul.f32 %v176_v53, %v176_v53  ;;  %v248_v29 = vsel %vm184_vm2, %v226_v63, 0.0  ;;  %v183_v53 = vld [vmem:[#allocation3] sm:$0xff] }
  0x2b   : > { %v197_v50 = vadd.f32 %v196_v41, %v195_v43  ;;  %v180_v30 = vsub.f32 %v718_v15, %v725_v18  ;;  %v208_v31 = vsel %vm184_vm2, %v179_v24, 0.0  ;;  %v229_v34 = vmul.f32 %v177_v59, %v177_v59 }
  0x2c   : > { %v245_v26 = vadd.f32 %v244_v0, %v243_v20  ;;  %v250_v35 = vsel %vm184_vm2, %v227_v22, 0.0  ;;  %v181_v36 = vsub.f32 %v720_v16, %v725_v18  ;;  %v230_v40 = vmul.f32 %v178_v1, %v178_v1 }
  0x2d   : > { %v199_v56 = vadd.f32 %v198_v48, %v197_v50  ;;  %v210_v37 = vsel %vm184_vm2, %v180_v30, 0.0  ;;  %v252_v41 = vsel %vm184_vm2, %v228_v28, 0.0  ;;  %v182_v42 = vsub.f32 %v722_v17, %v725_v18 }
  0x2e   : > { %v247_v32 = vadd.f32 %v246_v23, %v245_v26  ;;  %v212_v43 = vsel %vm184_vm2, %v181_v36, 0.0  ;;  %v231_v46 = vmul.f32 %v179_v24, %v179_v24  ;;  %v254_v47 = vsel %vm184_vm2, %v229_v34, 0.0 }
  0x2f   : > { %v201_v62 = vadd.f32 %v200_v54, %v199_v56  ;;  %v214_v48 = vsel %vm184_vm2, %v182_v42, 0.0  ;;  %v232_v51 = vmul.f32 %v180_v30, %v180_v30  ;;  %v256_v52 = vsel %vm184_vm2, %v230_v40, 0.0 }
  0x30   : > { %v249_v38 = vadd.f32 %v248_v29, %v247_v32  ;;  %v233_v56 = vmul.f32 %v181_v36, %v181_v36  ;;  %v258_v18 = vsel %vm184_vm2, %v231_v46, 0.0  ;;  %v234_v59 = vmul.f32 %v182_v42, %v182_v42 }
  0x31   : > { %v203_v21 = vadd.f32 %v202_v60, %v201_v62  ;;  %v260_v60 = vsel %vm184_vm2, %v232_v51, 0.0 }
  0x32   : > { %v251_v44 = vadd.f32 %v250_v35, %v249_v38  ;;  %v262_v62 = vsel %vm184_vm2, %v233_v56, 0.0  ;;  %v264_v0 = vsel %vm184_vm2, %v234_v59, 0.0 }
  0x33   : > { %v205_v27 = vadd.f32 %v204_v19, %v203_v21  ;;  %v218_v19 = vld [vmem:[#allocation4] sm:$0xff] }
  0x34   : > { %v253_v49 = vadd.f32 %v252_v41, %v251_v44 }
  0x35   : > { %v207_v33 = vadd.f32 %v206_v25, %v205_v27 }
  0x36   : > { %v255_v54 = vadd.f32 %v254_v47, %v253_v49 }
  0x37   : > { %v209_v39 = vadd.f32 %v208_v31, %v207_v33 }
  0x38   : > { %v257_v57 = vadd.f32 %v256_v52, %v255_v54 }
  0x39   : > { %v211_v45 = vadd.f32 %v210_v37, %v209_v39 }
  0x3a   : > { %v259_v61 = vadd.f32 %v258_v18, %v257_v57 }
  0x3b   : > { %v213_v50 = vadd.f32 %v212_v43, %v211_v45 }
  0x3c   : > { %v261_v63 = vadd.f32 %v260_v60, %v259_v61 }
  0x3d   : > { %v215_v55 = vadd.f32 %v214_v48, %v213_v50 }
  0x3e   : > { %v263_v1 = vadd.f32 %v262_v62, %v261_v63 }
  0x3f   : > { %v216_v58 = vadd.f32 %v215_v55, %v183_v53 }
  0x40   : > { %v265_v20 = vadd.f32 %v264_v0, %v263_v1 }
  0x41   : > { %217 = vst.msk [vmem:[#allocation3] sm:$0xff] %vm184_vm2, %v216_v58 }
  0x42   : > { %v266_v21 = vadd.f32 %v265_v20, %v218_v19 }
  0x44   : > { %267 = vst.msk [vmem:[#allocation4] sm:$0xff] %vm184_vm2, %v266_v21 }
  0x45 PF: > { %p550_p7 = scmp.ne.s32.totalorder %s642_s6, 1 }
  0x46   : > { %s551_s16 = sshll.u32 (!%p550_p7), %s642_s6, 7 }
  0x47   : > { %271 = sbr.rel (%p550_p7) target bundleno = 156 (0x9c), region = 36 }
  0x4c   : > { %v273_v22 = vlaneseq  ;;  %v795_v26 = vstv %s551_s16  ;;  %v797_v27 = vld [vmem:[#allocation2] ss:$0 sm:$0xff]  ;;  %vm360_vm3 = vcmask 654336  }
  0x4d   : > { %v327_v33 = vsub.f32 %v692_v2, %v797_v27  ;;  %v328_v34 = vsub.f32 %v694_v3, %v797_v27  ;;  %v329_v37 = vsub.f32 %v696_v4, %v797_v27  ;;  %v330_v38 = vsub.f32 %v698_v5, %v797_v27 }
  0x4e   : > { %v274_v23 = vshrl.u32 %v273_v22, 7  ;;  %v331_v40 = vsub.f32 %v700_v6, %v797_v27  ;;  %v332_v2 = vsub.f32 %v702_v7, %v797_v27  ;;  %v333_v3 = vsub.f32 %v704_v8, %v797_v27 }
  0x4f   : > { %v334_v0 = vsub.f32 %v706_v9, %v797_v27  ;;  %v335_v20 = vsub.f32 %v708_v10, %v797_v27 }
  0x50   : > { %v275_v24 = vadd.s32 8, %v274_v23  ;;  %v276_v25 = vadd.s32 16, %v274_v23  ;;  %v277_v28 = vadd.s32 24, %v274_v23  ;;  %v278_v29 = vadd.s32 32, %v274_v23 }
  0x51   : > { %v291_v30 = vadd.s32 %v795_v26, %v274_v23  ;;  %v279_v35 = vadd.s32 40, %v274_v23  ;;  %v280_v39 = vadd.s32 48, %v274_v23  ;;  %v281_v42 = vadd.s32 56, %v274_v23 }
  0x52   : > { %v292_v31 = vadd.s32 %v795_v26, %v275_v24  ;;  %v293_v32 = vadd.s32 %v795_v26, %v276_v25  ;;  %v294_v36 = vadd.s32 %v795_v26, %v277_v28  ;;  %v295_v41 = vadd.s32 %v795_v26, %v278_v29 }
  0x53   : > { %vm307_vm4 = vcmp.lt.s32.totalorder %v291_v30, 250  ;;  %v282_v4 = vadd.s32 64, %v274_v23  ;;  %v283_v43 = vadd.s32 72, %v274_v23  ;;  %v284_v44 = vadd.s32 80, %v274_v23 }
  0x54   : > { %vm308_vm5 = vcmp.lt.s32.totalorder %v292_v31, 250  ;;  %vm309_vm6 = vcmp.lt.s32.totalorder %v293_v32, 250  ;;  %v285_v5 = vadd.s32 88, %v274_v23  ;;  %v286_v45 = vadd.s32 96, %v274_v23 }
  0x55   : > { %v296_v46 = vadd.s32 %v795_v26, %v279_v35  ;;  %vm310_vm7 = vcmp.lt.s32.totalorder %v294_v36, 250  ;;  %v297_v6 = vadd.s32 %v795_v26, %v280_v39  ;;  %v343_v7 = vsel %vm307_vm4, %v327_v33, 0.0 }
  0x56   : > { %v344_v47 = vsel %vm308_vm5, %v328_v34, 0.0  ;;  %v345_v48 = vsel %vm309_vm6, %v329_v37, 0.0  ;;  %v287_v8 = vadd.s32 104, %v274_v23  ;;  %v288_v49 = vadd.s32 112, %v274_v23 }
  0x57   : > { %v289_v50 = vadd.s32 120, %v274_v23  ;;  %vm311_vm8 = vcmp.lt.s32.totalorder %v295_v41, 250  ;;  %v298_v51 = vadd.s32 %v795_v26, %v281_v42  ;;  %v299_v52 = vadd.s32 %v795_v26, %v282_v4 }
  0x58   : > { %v300_v53 = vadd.s32 %v795_v26, %v283_v43  ;;  %v346_v54 = vsel %vm310_vm7, %v330_v38, 0.0  ;;  %vm312_vm9 = vcmp.lt.s32.totalorder %v296_v46, 250  ;;  %v361_v55 = vsel %vm360_vm3, %v343_v7, 0.0 }
  0x59   : > { %v362_v56 = vsel %vm360_vm3, %v344_v47, 0.0  ;;  %v364_v18 = vsel %vm360_vm3, %v345_v48, 0.0  ;;  %v301_v57 = vadd.s32 %v795_v26, %v284_v44  ;;  %vm313_vm10 = vcmp.lt.s32.totalorder %v297_v6, 250 }
  0x5a   : > { %v347_v58 = vsel %vm311_vm8, %v331_v40, 0.0  ;;  %v363_v59 = vadd.f32 %v362_v56, %v361_v55  ;;  %v302_v60 = vadd.s32 %v795_v26, %v285_v5  ;;  %v303_v61 = vadd.s32 %v795_v26, %v286_v45 }
  0x5b   : > { %v830_v62 = vadd.s32 %v795_v26, %v287_v8  ;;  %v366_v63 = vsel %vm360_vm3, %v346_v54, 0.0  ;;  %vm314_vm11 = vcmp.lt.s32.totalorder %v298_v51, 250  ;;  %v348_v1 = vsel %vm312_vm9, %v332_v2, 0.0 }
  0x5c   : > { %v365_v19 = vadd.f32 %v364_v18, %v363_v59  ;;  %vm315_vm12 = vcmp.lt.s32.totalorder %v299_v52, 250  ;;  %v349_v21 = vsel %vm313_vm10, %v333_v3, 0.0  ;;  %v368_v22 = vsel %vm360_vm3, %v347_v58, 0.0 }
  0x5d   : > { %v395_v24 = vmul.f32 %v343_v7, %v343_v7  ;;  %v396_v25 = vmul.f32 %v344_v47, %v344_v47  ;;  %v397_v28 = vmul.f32 %v345_v48, %v345_v48  ;;  %v305_v29 = vadd.s32 %v795_v26, %v288_v49 }
  0x5e   : > { %v367_v23 = vadd.f32 %v366_v63, %v365_v19  ;;  %v840_v30 = vadd.s32 %v795_v26, %v289_v50  ;;  %vm316_vm13 = vcmp.lt.s32.totalorder %v300_v53, 250  ;;  %v370_v9 = vsel %vm360_vm3, %v348_v1, 0.0 }
  0x5f   : > { %v336_v31 = vsub.f32 %v710_v11, %v797_v27  ;;  %v350_v10 = vsel %vm314_vm11, %v334_v0, 0.0  ;;  %v398_v33 = vmul.f32 %v346_v54, %v346_v54  ;;  %v337_v34 = vsub.f32 %v712_v12, %v797_v27 }
  0x60   : > { %v369_v32 = vadd.f32 %v368_v22, %v367_v23  ;;  %v351_v35 = vsel %vm315_vm12, %v335_v20, 0.0  ;;  %v372_v36 = vsel %vm360_vm3, %v349_v21, 0.0  ;;  %v399_v37 = vmul.f32 %v347_v58, %v347_v58 }
  0x61   : > { %v411_v38 = vsel %vm360_vm3, %v395_v24, 0.0  ;;  %v412_v39 = vsel %vm360_vm3, %v396_v25, 0.0  ;;  %v414_v40 = vsel %vm360_vm3, %v397_v28, 0.0  ;;  %vm317_vm14 = vcmp.lt.s32.totalorder %v301_v57, 250 }
  0x62   : > { %v371_v26 = vadd.f32 %v370_v9, %v369_v32  ;;  %v338_v11 = vsub.f32 %v714_v13, %v797_v27  ;;  %v374_v2 = vsel %vm360_vm3, %v350_v10, 0.0  ;;  %v413_v3 = vadd.f32 %v412_v39, %v411_v38 }
  0x63   : > { %v352_v12 = vsel %vm316_vm13, %v336_v31, 0.0  ;;  %v400_v42 = vmul.f32 %v348_v1, %v348_v1  ;;  %v416_v4 = vsel %vm360_vm3, %v398_v33, 0.0  ;;  %vm318_vm15 = vcmp.lt.s32.totalorder %v302_v60, 250 }
  0x64   : > { %v373_v41 = vadd.f32 %v372_v36, %v371_v26  ;;  %v339_v43 = vsub.f32 %v716_v14, %v797_v27  ;;  %v376_v44 = vsel %vm360_vm3, %v351_v35, 0.0  ;;  %v415_v5 = vadd.f32 %v414_v40, %v413_v3 }
  0x65   : > { %v353_v45 = vsel %vm317_vm14, %v337_v34, 0.0  ;;  %v401_v6 = vmul.f32 %v349_v21, %v349_v21  ;;  %v418_v13 = vsel %vm360_vm3, %v399_v37, 0.0  ;;  %vm319_vm0 = vcmp.lt.s32.totalorder %v303_v61, 250 }
  0x66   : > { %v375_v46 = vadd.f32 %v374_v2, %v373_v41  ;;  %v340_v7 = vsub.f32 %v718_v15, %v797_v27  ;;  %v378_v47 = vsel %vm360_vm3, %v352_v12, 0.0  ;;  %v417_v48 = vadd.f32 %v416_v4, %v415_v5  ;;  %v394_v5 = vld [vmem:[#allocation4] sm:$0xff] }
  0x67   : > { %v354_v8 = vsel %vm318_vm15, %v338_v11, 0.0  ;;  %v402_v50 = vmul.f32 %v350_v10, %v350_v10  ;;  %v420_v14 = vsel %vm360_vm3, %v400_v42, 0.0  ;;  %vm320_vm1 = vcmp.lt.s32.totalorder %v830_v62, 250 }
  0x68   : > { %v377_v49 = vadd.f32 %v376_v44, %v375_v46  ;;  %v341_v51 = vsub.f32 %v720_v16, %v797_v27  ;;  %v380_v52 = vsel %vm360_vm3, %v353_v45, 0.0  ;;  %v419_v53 = vadd.f32 %v418_v13, %v417_v48 }
  0x69   : > { %v355_v54 = vsel %vm319_vm0, %v339_v43, 0.0  ;;  %v403_v56 = vmul.f32 %v351_v35, %v351_v35  ;;  %v422_v15 = vsel %vm360_vm3, %v401_v6, 0.0  ;;  %vm321_vm2 = vcmp.lt.s32.totalorder %v305_v29, 250  ;;  %v359_v35 = vld [vmem:[#allocation3] sm:$0xff] }
  0x6a   : > { %v379_v55 = vadd.f32 %v378_v47, %v377_v49  ;;  %v342_v18 = vsub.f32 %v722_v17, %v797_v27  ;;  %v382_v57 = vsel %vm360_vm3, %v354_v8, 0.0  ;;  %v421_v58 = vadd.f32 %v420_v14, %v419_v53 }
  0x6b   : > { %v356_v59 = vsel %vm320_vm1, %v340_v7, 0.0  ;;  %v404_v61 = vmul.f32 %v352_v12, %v352_v12  ;;  %v424_v16 = vsel %vm360_vm3, %v402_v50, 0.0  ;;  %vm322_vm4 = vcmp.lt.s32.totalorder %v840_v30, 250 }
  0x6c   : > { %v381_v60 = vadd.f32 %v380_v52, %v379_v55  ;;  %v384_v62 = vsel %vm360_vm3, %v355_v54, 0.0  ;;  %v423_v63 = vadd.f32 %v422_v15, %v421_v58  ;;  %v357_v0 = vsel %vm321_vm2, %v341_v51, 0.0 }
  0x6d   : > { %v405_v19 = vmul.f32 %v353_v45, %v353_v45  ;;  %v426_v20 = vsel %vm360_vm3, %v403_v56, 0.0  ;;  %v386_v17 = vsel %vm360_vm3, %v356_v59, 0.0  ;;  %v358_v21 = vsel %vm322_vm4, %v342_v18, 0.0 }
  0x6e   : > { %v383_v1 = vadd.f32 %v382_v57, %v381_v60  ;;  %v425_v27 = vadd.f32 %v424_v16, %v423_v63  ;;  %v406_v23 = vmul.f32 %v354_v8, %v354_v8  ;;  %v428_v24 = vsel %vm360_vm3, %v404_v61, 0.0 }
  0x6f   : > { %v388_v25 = vsel %vm360_vm3, %v357_v0, 0.0  ;;  %v407_v30 = vmul.f32 %v355_v54, %v355_v54  ;;  %v430_v9 = vsel %vm360_vm3, %v405_v19, 0.0  ;;  %v390_v31 = vsel %vm360_vm3, %v358_v21, 0.0 }
  0x70   : > { %v385_v22 = vadd.f32 %v384_v62, %v383_v1  ;;  %v427_v28 = vadd.f32 %v426_v20, %v425_v27  ;;  %v408_v33 = vmul.f32 %v356_v59, %v356_v59  ;;  %v432_v34 = vsel %vm360_vm3, %v406_v23, 0.0 }
  0x71   : > { %v409_v26 = vmul.f32 %v357_v0, %v357_v0  ;;  %v434_v38 = vsel %vm360_vm3, %v407_v30, 0.0  ;;  %v410_v11 = vmul.f32 %v358_v21, %v358_v21  ;;  %v653_v3 = vmov 250.0  }
  0x72   : > { %v387_v29 = vadd.f32 %v386_v17, %v385_v22  ;;  %v429_v10 = vadd.f32 %v428_v24, %v427_v28  ;;  %v436_v2 = vsel %vm360_vm3, %v408_v33, 0.0  ;;  %592 = vrcp.f32 %v653_v3 }
  0x73   : > { %v438_v41 = vsel %vm360_vm3, %v409_v26, 0.0  ;;  %v440_v4 = vsel %vm360_vm3, %v410_v11, 0.0  ;;  %v654_v45 = vmov 249.0   ;;  %vm478_vm7 = vcmask 647168  }
  0x74   : > { %v389_v32 = vadd.f32 %v388_v25, %v387_v29  ;;  %v431_v36 = vadd.f32 %v430_v9, %v429_v10  ;;  %594 = vrcp.f32 %v654_v45 }
  0x76   : > { %v391_v37 = vadd.f32 %v390_v31, %v389_v32  ;;  %v433_v39 = vadd.f32 %v432_v34, %v431_v36 }
  0x78   : > { %v392_v40 = vadd.f32 %v391_v37, %v359_v35  ;;  %v435_v12 = vadd.f32 %v434_v38, %v433_v39  ;;  %v593_v44 = vpop.eup %592 }
  0x79   : > { %v462_v7 = vmul.f32 250.0, %v593_v44  ;;  %vm466_vm5 = vweird.f32 %v593_v44 }
  0x7a   : > { %393 = vst.msk [vmem:[#allocation3] sm:$0xff] %vm360_vm3, %v392_v40  ;;  %v437_v42 = vadd.f32 %v436_v2, %v435_v12  ;;  %v595_v8 = vpop.eup %594 }
  0x7b   : > { %v463_v50 = vsub.f32 1.0, %v462_v7  ;;  %v471_v51 = vmul.f32 249.0, %v595_v8  ;;  %vm475_vm6 = vweird.f32 %v595_v8 }
  0x7c   : > { %v439_v43 = vadd.f32 %v438_v41, %v437_v42 }
  0x7d   : > { %v464_v53 = vmul.f32 %v593_v44, %v463_v50  ;;  %v472_v15 = vsub.f32 1.0, %v471_v51 }
  0x7e   : > { %v441_v46 = vadd.f32 %v440_v4, %v439_v43 }
  0x7f   : > { %v465_v58 = vadd.f32 %v593_v44, %v464_v53  ;;  %v473_v60 = vmul.f32 %v595_v8, %v472_v15 }
  0x80   : > { %v442_v6 = vadd.f32 %v441_v46, %v394_v5 }
  0x81   : > { %v444_v13 = vld [vmem:[#allocation3] sm:$0xff]  ;;  %v467_v62 = vsel %vm466_vm5, %v593_v44, %v465_v58  ;;  %v474_v0 = vadd.f32 %v595_v8, %v473_v60 }
  0x82   : > { %v445_v47 = vsel %vm360_vm3, %v444_v13, 0.0  ;;  %443 = vst.msk [vmem:[#allocation4] sm:$0xff] %vm360_vm3, %v442_v6 }
  0x83   : > { %v446_v48 = vrot.slane %v445_v47, 4  ;;  %v476_v17 = vsel %vm475_vm6, %v595_v8, %v474_v0 }
  0x85   : > { %v447_v49 = vadd.f32 %v446_v48, %v445_v47 }
  0x87   : > { %v448_v14 = vrot.slane %v447_v49, 2 }
  0x89   : > { %v449_v52 = vadd.f32 %v448_v14, %v447_v49  ;;  %v452_v54 = vld [vmem:[#allocation4] sm:$0xff] }
  0x8a   : > { %v453_v56 = vsel %vm360_vm3, %v452_v54, 0.0 }
  0x8b   : > { %v450_v55 = vrot.slane %v449_v52, 1  ;;  %v454_v18 = vrot.slane %v453_v56, 4 }
  0x8d   : > { %v451_v57 = vadd.f32 %v450_v55, %v449_v52  ;;  %v455_v59 = vadd.f32 %v454_v18, %v453_v56 }
  0x8f   : > { %v456_v61 = vrot.slane %v455_v59, 2  ;;  %v460_v16 = vmul.f32 %v451_v57, %v451_v57 }
  0x91   : > { %v457_v63 = vadd.f32 %v456_v61, %v455_v59  ;;  %v468_v19 = vmul.f32 %v467_v62, %v460_v16 }
  0x93   : > { %v458_v1 = vrot.slane %v457_v63, 1 }
  0x95   : > { %v459_v20 = vadd.f32 %v458_v1, %v457_v63 }
  0x97   : > { %v469_v27 = vsub.f32 %v459_v20, %v468_v19 }
  0x99   : > { %v477_v21 = vmul.f32 %v476_v17, %v469_v27 }
  0x9b   : > { %479 = vst.msk [vmem:[#allocation5] sm:$0x1] %vm478_vm7, %v477_v21 }
  0x9c PF: > { %p560_p8 = scmp.eq.s32.totalorder %s542_s9, 1  ;;  %s489_s19 = sshll.u32 %s907_s1, 4  ;;  %s490_s19 = int_to_ptr.hbm [resolvable:$true] %s489_s19 }
  0x9d   : > { %s655_s20 = smov [#allocation5]  }
  0x9e   : > { %s487_s21 = sshll.u32 %s655_s20, 4  ;;  %s488_s21 = int_to_ptr.vmem [resolvable:$true] %s487_s21 }
  0x9f   : > { %557 = dma.vmem_to_hbm [thread:$0]  (%p560_p8), %s488_s21, 16, %s490_s19, [#allocation6]  }
  0xa0   : > { %637 = dma.done.wait (%p560_p8), [#allocation6], 16  }
  0xa1   : > { %639 = vsyncadd (%p560_p8), [#allocation6], 4294967280 }
  0xa2 PF: > { %s12_s8 = sadd.s32 1, %s650_s8   ;;  %s908_s6 = smov %s646_s7 }
  0xa3   : > { %p9_p9 = scmp.ge.s32.totalorder %s12_s8, 4   ;;  %s909_s7 = smov %s911_s10 }
  0xa5   :  { %11 = sbr.rel (!%p9_p9) target bundleno = 2 (0x2), region = 64 }
  0xaa   :  { %503 = vsyncpa [#allocation6], 1 }
  0xab   :  { %505 = vsyncpa [#allocation6 + $0x1], 1 }

</bundles_post_ra>
